<compile_context>
chip_gen: v7x
topology: tpu7x:2x2x1
jax: 0.10.0
libtpu: 0.0.40
codegen_flags: <defaults>
</compile_context>

<pallas_src>
import jax
import jax.numpy as jnp
from jax.experimental import pallas as pl
from jax.experimental.pallas import tpu as pltpu


def deeponet_kernel(u_ref, y_ref,
                    wb1_ref, bb1_ref, wb2_ref, bb2_ref,
                    wt1_ref, bt1_ref, wt2_ref, bt2_ref,
                    obias_ref, out_ref):
    # ---- branch MLP: tanh(u @ Wb1 + bb1) @ Wb2 + bb2 ------------------------
    hb = jnp.tanh(
        jnp.dot(u_ref[...], wb1_ref[...], preferred_element_type=jnp.float32)
        + bb1_ref[...])                                           # [tb, H] f32
    b = jnp.dot(hb.astype(wb2_ref.dtype), wb2_ref[...],
                preferred_element_type=jnp.float32) + bb2_ref[...]  # [tb, P] f32

    # ---- trunk MLP: tanh(y @ Wt1 + bt1) @ Wt2 + bt2 --------------------------
    ht = jnp.tanh(
        jnp.dot(y_ref[...], wt1_ref[...], preferred_element_type=jnp.float32)
        + bt1_ref[...])                                           # [tb, H] f32
    t = jnp.dot(ht.astype(wt2_ref.dtype), wt2_ref[...],
                preferred_element_type=jnp.float32) + bt2_ref[...]  # [tb, P] f32

    # ---- DeepONet combine: per-row dot product over the latent dim P ---------
    # Plain cross-lane reduce (XLU); output block is (tile_b, 1) so the store
    # cost is tile_b*4 bytes per step - irrelevant next to the matmuls.
    s = jnp.sum(b * t, axis=-1, keepdims=True)                    # [tb, 1] f32
    out_ref[...] = (s + obias_ref[0, 0]).astype(out_ref.dtype)


def prepare_deeponet_params(params, *, mxu_dtype=jnp.bfloat16,
                            use_output_bias=True):
    """One-time parameter prep (dtype casts / bias layout).

    Call ONCE and reuse the result across forward calls so the casts are not
    re-materialized in HBM on every step.
    """
    prepped = {
        "wb1": jnp.asarray(params["wb1"]).astype(mxu_dtype),
        "wb2": jnp.asarray(params["wb2"]).astype(mxu_dtype),
        "wt1": jnp.asarray(params["wt1"]).astype(mxu_dtype),
        "wt2": jnp.asarray(params["wt2"]).astype(mxu_dtype),
        "bb1": jnp.asarray(params["bb1"]).reshape(1, -1).astype(jnp.float32),
        "bb2": jnp.asarray(params["bb2"]).reshape(1, -1).astype(jnp.float32),
        "bt1": jnp.asarray(params["bt1"]).reshape(1, -1).astype(jnp.float32),
        "bt2": jnp.asarray(params["bt2"]).reshape(1, -1).astype(jnp.float32),
    }
    if use_output_bias:
        ob = params.get("output_bias")
        if ob is None:
            raise ValueError("use_output_bias=True but params['output_bias'] is None")
        prepped["output_bias"] = jnp.asarray(ob).reshape(1, 1).astype(jnp.float32)
    else:
        prepped["output_bias"] = jnp.zeros((1, 1), dtype=jnp.float32)
    return prepped


def _pick_tile_b(B):
    if B < 256:
        return B          # single grid step: zero per-step pipeline overhead
    # Large B: big tiles amortize the ~0.35us/step overhead (plenty of VMEM on
    # v5e/v6e), but always leave >= 2 "parallel" steps so v7x's two
    # TensorCores both get work.  Multiples of 128 map cleanly on every MXU.
    for t in (512, 256, 128):
        if B % t == 0 and B // t >= 2:
            return t
    return B              # awkward batch size: fall back to one whole-batch step


def _vmem_limit_bytes(tile_b, M, D, H, P, mxu_itemsize):
    # batch-tiled operands (u, y, out) are double-buffered by the pipeline
    act = 2 * tile_b * (M + D) * mxu_itemsize + 2 * tile_b * 4
    # grid-invariant weights/biases: whole-array VMEM residents (single copy)
    wts = (M * H + D * H + 2 * H * P) * mxu_itemsize + (2 * H + 2 * P) * 4
    # f32 intermediates (hb, ht, b, t, b*t) + slack for vregs/compiler scratch
    inter = tile_b * (2 * H + 3 * P) * 4
    need = act + wts + inter
    # floor at 32 MiB, cap at 64 MiB so the limit is valid on v7x as well
    return max(32 << 20, min(int(1.5 * need) + (2 << 20), 64 << 20))


def deeponet_forward(u, y, prepped, *, tile_b=None):
    """Fused DeepONet forward: out[i] = sum_p branch(u)[i,p] * trunk(y)[i,p] (+ bias)."""
    B, M = u.shape
    By, D = y.shape
    assert By == B, "u and y must share the batch dimension"
    H = prepped["wb1"].shape[1]
    P = prepped["wb2"].shape[1]
    assert prepped["wt1"].shape == (D, H) and prepped["wt2"].shape == (H, P)
    mxu_dtype = prepped["wb1"].dtype

    u = u.astype(mxu_dtype)
    y = y.astype(mxu_dtype)

    if tile_b is None:
        tile_b = _pick_tile_b(B)
    assert B % tile_b == 0
    grid = (B // tile_b,)

    batch_map = lambda i: (i, 0)
    # Grid-invariant operands: whole array resident in VMEM, single copy,
    # no per-step double-buffer DMA (equivalent to pipeline_mode=pl.Buffered(1)).
    resident = pl.BlockSpec(memory_space=pltpu.MemorySpace.VMEM)

    in_specs = [
        pl.BlockSpec((tile_b, M), batch_map),                # u   (batch-tiled)
        pl.BlockSpec((tile_b, D), batch_map),                # y   (batch-tiled)
        resident, resident,                                  # Wb1, bb1
        resident, resident,                                  # Wb2, bb2
        resident, resident,                                  # Wt1, bt1
        resident, resident,                                  # Wt2, bt2
        pl.BlockSpec(memory_space=pltpu.MemorySpace.SMEM),   # scalar output bias
    ]
    out_specs = pl.BlockSpec((tile_b, 1), batch_map)

    vmem_limit = _vmem_limit_bytes(tile_b, M, D, H, P,
                                   jnp.dtype(mxu_dtype).itemsize)

    out = pl.pallas_call(
        deeponet_kernel,
        out_shape=jax.ShapeDtypeStruct((B, 1), jnp.float32),
        grid=grid,
        in_specs=in_specs,
        out_specs=out_specs,
        compiler_params=pltpu.CompilerParams(
            dimension_semantics=("parallel",),
            vmem_limit_bytes=vmem_limit,
        ),
    )(u, y,
      prepped["wb1"], prepped["bb1"], prepped["wb2"], prepped["bb2"],
      prepped["wt1"], prepped["bt1"], prepped["wt2"], prepped["bt2"],
      prepped["output_bias"])
    return out


def deeponet_reference(u, y, params, use_output_bias=True):
    b = jnp.tanh(u @ params["wb1"] + params["bb1"]) @ params["wb2"] + params["bb2"]
    t = jnp.tanh(y @ params["wt1"] + params["bt1"]) @ params["wt2"] + params["bt2"]
    out = jnp.sum(b * t, axis=-1, keepdims=True)
    if use_output_bias:
        out = out + params["output_bias"].reshape(1, 1)
    return out


if __name__ == "__main__":
    # Small shapes: batch=16, sensors M=16, coord-dim D=8, hidden H=32, latent P=32
    B, M, D, H, P = 16, 16, 8, 32, 32

    key = jax.random.PRNGKey(0)
    k_u, k_y, k1, k2, k3, k4, k5, k6, k7, k8 = jax.random.split(key, 10)

    u = jax.random.normal(k_u, (B, M), dtype=jnp.float32)
    y = jax.random.normal(k_y, (B, D), dtype=jnp.float32)

    params = {
        "wb1": jax.random.normal(k1, (M, H), dtype=jnp.float32) * 0.1,
        "bb1": jax.random.normal(k5, (1, H), dtype=jnp.float32) * 0.05,
        "wb2": jax.random.normal(k2, (H, P), dtype=jnp.float32) * 0.1,
        "bb2": jax.random.normal(k6, (1, P), dtype=jnp.float32) * 0.05,
        "wt1": jax.random.normal(k3, (D, H), dtype=jnp.float32) * 0.1,
        "bt1": jax.random.normal(k7, (1, H), dtype=jnp.float32) * 0.05,
        "wt2": jax.random.normal(k4, (H, P), dtype=jnp.float32) * 0.1,
        "bt2": jax.random.normal(k8, (1, P), dtype=jnp.float32) * 0.05,
        # nn.Parameter(torch.zeros(1)) -> scalar learnable bias (nonzero here
        # to exercise the add path).
        "output_bias": jnp.full((1,), 0.123, dtype=jnp.float32),
    }
    # TODO(synk): evaluate_with_gradients (autograd wrt u, y) is obtained with
    # jax.grad around deeponet_forward outside the kernel; encode_branch /
    # encode_trunk are trivially the two halves of the kernel and are not
    # exposed separately. Only the fused forward pass is implemented in Pallas.

    # ---- with output bias ----------------------------------------------------
    ref = deeponet_reference(u, y, params, use_output_bias=True)

    # Exact f32-at-MXU path (debug): tight check against the reference.
    p_f32 = prepare_deeponet_params(params, mxu_dtype=jnp.float32,
                                    use_output_bias=True)
    out_f32 = jax.block_until_ready(deeponet_forward(u, y, p_f32))
    assert out_f32.shape == (B, 1)
    assert jnp.allclose(out_f32, ref, atol=1e-4, rtol=1e-4)

    # Production bf16-at-MXU path (f32 accumulation): looser tolerance.
    p_bf16 = prepare_deeponet_params(params, mxu_dtype=jnp.bfloat16,
                                     use_output_bias=True)
    out_bf16 = jax.block_until_ready(deeponet_forward(u, y, p_bf16))
    assert out_bf16.shape == (B, 1)
    assert jnp.allclose(out_bf16, ref, atol=3e-2, rtol=3e-2)

    # ---- without output bias (module default use_output_bias=False) ----------
    ref_nb = deeponet_reference(u, y, params, use_output_bias=False)
    p_nb = prepare_deeponet_params(params, mxu_dtype=jnp.float32,
                                   use_output_bias=False)
    out_nb = jax.block_until_ready(deeponet_forward(u, y, p_nb))
    assert jnp.allclose(out_nb, ref_nb, atol=1e-4, rtol=1e-4)

    print("KERNEL_OK")
</pallas_src>

<mosaic_0001>
module attributes {stable_mosaic.version = 11 : i64} {
  func.func @deeponet_kernel(%arg0: i32, %arg1: memref<16x16xf32, #tpu.memory_space<vmem>>, %arg2: memref<16x8xf32, #tpu.memory_space<vmem>>, %arg3: memref<16x32xf32, #tpu.memory_space<vmem>>, %arg4: memref<1x32xf32, #tpu.memory_space<vmem>>, %arg5: memref<32x32xf32, #tpu.memory_space<vmem>>, %arg6: memref<1x32xf32, #tpu.memory_space<vmem>>, %arg7: memref<8x32xf32, #tpu.memory_space<vmem>>, %arg8: memref<1x32xf32, #tpu.memory_space<vmem>>, %arg9: memref<32x32xf32, #tpu.memory_space<vmem>>, %arg10: memref<1x32xf32, #tpu.memory_space<vmem>>, %arg11: memref<1x1xf32, #tpu.memory_space<smem>>, %arg12: memref<16x1xf32, #tpu.memory_space<vmem>>) attributes {dimension_semantics = [#tpu.dimension_semantics<parallel>], iteration_bounds = array<i64: 1>, scalar_prefetch = 0 : i64, scratch_operands = 0 : i64, tpu.core_type = #tpu.core_type<tc>, window_params = [{transform_indices = @transform_0, window_bounds = array<i64: 16, 16>}, {transform_indices = @transform_1, window_bounds = array<i64: 16, 8>}, {pipeline_mode = #tpu.pipeline_mode<synchronous>, transform_indices = @transform_2, window_bounds = array<i64: 16, 32>}, {pipeline_mode = #tpu.pipeline_mode<synchronous>, transform_indices = @transform_3, window_bounds = array<i64: 1, 32>}, {pipeline_mode = #tpu.pipeline_mode<synchronous>, transform_indices = @transform_4, window_bounds = array<i64: 32, 32>}, {pipeline_mode = #tpu.pipeline_mode<synchronous>, transform_indices = @transform_5, window_bounds = array<i64: 1, 32>}, {pipeline_mode = #tpu.pipeline_mode<synchronous>, transform_indices = @transform_6, window_bounds = array<i64: 8, 32>}, {pipeline_mode = #tpu.pipeline_mode<synchronous>, transform_indices = @transform_7, window_bounds = array<i64: 1, 32>}, {pipeline_mode = #tpu.pipeline_mode<synchronous>, transform_indices = @transform_8, window_bounds = array<i64: 32, 32>}, {pipeline_mode = #tpu.pipeline_mode<synchronous>, transform_indices = @transform_9, window_bounds = array<i64: 1, 32>}, {transform_indices = @transform_10, window_bounds = array<i64: 1, 1>}, {transform_indices = @transform_11, window_bounds = array<i64: 16, 1>}]} {
    %c0 = arith.constant 0 : index
    %c0_0 = arith.constant 0 : index
    %0 = vector.load %arg1[%c0, %c0_0] : memref<16x16xf32, #tpu.memory_space<vmem>>, vector<16x16xf32>
    %c0_1 = arith.constant 0 : index
    %c0_2 = arith.constant 0 : index
    %1 = vector.load %arg3[%c0_1, %c0_2] : memref<16x32xf32, #tpu.memory_space<vmem>>, vector<16x32xf32>
    %cst = arith.constant dense<0.000000e+00> : vector<16x32xf32>
    %2 = tpu.matmul %0, %1, %cst {dimension_numbers = #tpu.dot_dimension_numbers<[1], [0], [0], [1], [0, 0, 1, 1], [], []>} : vector<16x16xf32>, vector<16x32xf32>, vector<16x32xf32> -> vector<16x32xf32>
    %c0_3 = arith.constant 0 : index
    %c0_4 = arith.constant 0 : index
    %3 = vector.load %arg4[%c0_3, %c0_4] : memref<1x32xf32, #tpu.memory_space<vmem>>, vector<1x32xf32>
    %4 = vector.broadcast %3 : vector<1x32xf32> to vector<16x32xf32>
    %5 = arith.addf %2, %4 : vector<16x32xf32>
    %6 = math.tanh %5 : vector<16x32xf32>
    %c0_5 = arith.constant 0 : index
    %c0_6 = arith.constant 0 : index
    %7 = vector.load %arg5[%c0_5, %c0_6] : memref<32x32xf32, #tpu.memory_space<vmem>>, vector<32x32xf32>
    %cst_7 = arith.constant dense<0.000000e+00> : vector<16x32xf32>
    %8 = tpu.matmul %6, %7, %cst_7 {dimension_numbers = #tpu.dot_dimension_numbers<[1], [0], [0], [1], [0, 0, 1, 1], [], []>} : vector<16x32xf32>, vector<32x32xf32>, vector<16x32xf32> -> vector<16x32xf32>
    %c0_8 = arith.constant 0 : index
    %c0_9 = arith.constant 0 : index
    %9 = vector.load %arg6[%c0_8, %c0_9] : memref<1x32xf32, #tpu.memory_space<vmem>>, vector<1x32xf32>
    %10 = vector.broadcast %9 : vector<1x32xf32> to vector<16x32xf32>
    %11 = arith.addf %8, %10 : vector<16x32xf32>
    %c0_10 = arith.constant 0 : index
    %c0_11 = arith.constant 0 : index
    %12 = vector.load %arg2[%c0_10, %c0_11] : memref<16x8xf32, #tpu.memory_space<vmem>>, vector<16x8xf32>
    %c0_12 = arith.constant 0 : index
    %c0_13 = arith.constant 0 : index
    %13 = vector.load %arg7[%c0_12, %c0_13] : memref<8x32xf32, #tpu.memory_space<vmem>>, vector<8x32xf32>
    %cst_14 = arith.constant dense<0.000000e+00> : vector<16x32xf32>
    %14 = tpu.matmul %12, %13, %cst_14 {dimension_numbers = #tpu.dot_dimension_numbers<[1], [0], [0], [1], [0, 0, 1, 1], [], []>} : vector<16x8xf32>, vector<8x32xf32>, vector<16x32xf32> -> vector<16x32xf32>
    %c0_15 = arith.constant 0 : index
    %c0_16 = arith.constant 0 : index
    %15 = vector.load %arg8[%c0_15, %c0_16] : memref<1x32xf32, #tpu.memory_space<vmem>>, vector<1x32xf32>
    %16 = vector.broadcast %15 : vector<1x32xf32> to vector<16x32xf32>
    %17 = arith.addf %14, %16 : vector<16x32xf32>
    %18 = math.tanh %17 : vector<16x32xf32>
    %c0_17 = arith.constant 0 : index
    %c0_18 = arith.constant 0 : index
    %19 = vector.load %arg9[%c0_17, %c0_18] : memref<32x32xf32, #tpu.memory_space<vmem>>, vector<32x32xf32>
    %cst_19 = arith.constant dense<0.000000e+00> : vector<16x32xf32>
    %20 = tpu.matmul %18, %19, %cst_19 {dimension_numbers = #tpu.dot_dimension_numbers<[1], [0], [0], [1], [0, 0, 1, 1], [], []>} : vector<16x32xf32>, vector<32x32xf32>, vector<16x32xf32> -> vector<16x32xf32>
    %c0_20 = arith.constant 0 : index
    %c0_21 = arith.constant 0 : index
    %21 = vector.load %arg10[%c0_20, %c0_21] : memref<1x32xf32, #tpu.memory_space<vmem>>, vector<1x32xf32>
    %22 = vector.broadcast %21 : vector<1x32xf32> to vector<16x32xf32>
    %23 = arith.addf %20, %22 : vector<16x32xf32>
    %24 = arith.mulf %11, %23 : vector<16x32xf32>
    %cst_22 = arith.constant dense<0.000000e+00> : vector<16xf32>
    %25 = vector.multi_reduction <add>, %24, %cst_22 [1] : vector<16x32xf32> to vector<16xf32>
    %26 = vector.shape_cast %25 : vector<16xf32> to vector<16x1xf32>
    %c0_23 = arith.constant 0 : index
    %c0_24 = arith.constant 0 : index
    %27 = memref.load %arg11[%c0_23, %c0_24] : memref<1x1xf32, #tpu.memory_space<smem>>
    %28 = vector.broadcast %27 : f32 to vector<16x1xf32>
    %29 = arith.addf %26, %28 : vector<16x1xf32>
    %c0_25 = arith.constant 0 : index
    %c0_26 = arith.constant 0 : index
    %30 = vector.load %arg12[%c0_25, %c0_26] : memref<16x1xf32, #tpu.memory_space<vmem>>, vector<16x1xf32>
    tpu.vector_store %arg12[%c0_25, %c0_26], %29 {strides = array<i32>} : memref<16x1xf32, #tpu.memory_space<vmem>>, vector<16x1xf32>,
    return
  }
  func.func @transform_0(%arg0: i32) -> (i32, i32) {
    %c0_i32 = arith.constant 0 : i32
    %c0_i32_0 = arith.constant 0 : i32
    return %arg0, %c0_i32 : i32, i32
  }
  func.func @transform_1(%arg0: i32) -> (i32, i32) {
    %c0_i32 = arith.constant 0 : i32
    %c0_i32_0 = arith.constant 0 : i32
    return %arg0, %c0_i32 : i32, i32
  }
  func.func @transform_2(%arg0: i32) -> (i32, i32) {
    %c0_i32 = arith.constant 0 : i32
    %c0_i32_0 = arith.constant 0 : i32
    %c0_i32_1 = arith.constant 0 : i32
    return %c0_i32, %c0_i32_0 : i32, i32
  }
  func.func @transform_3(%arg0: i32) -> (i32, i32) {
    %c0_i32 = arith.constant 0 : i32
    %c0_i32_0 = arith.constant 0 : i32
    %c0_i32_1 = arith.constant 0 : i32
    return %c0_i32, %c0_i32_0 : i32, i32
  }
  func.func @transform_4(%arg0: i32) -> (i32, i32) {
    %c0_i32 = arith.constant 0 : i32
    %c0_i32_0 = arith.constant 0 : i32
    %c0_i32_1 = arith.constant 0 : i32
    return %c0_i32, %c0_i32_0 : i32, i32
  }
  func.func @transform_5(%arg0: i32) -> (i32, i32) {
    %c0_i32 = arith.constant 0 : i32
    %c0_i32_0 = arith.constant 0 : i32
    %c0_i32_1 = arith.constant 0 : i32
    return %c0_i32, %c0_i32_0 : i32, i32
  }
  func.func @transform_6(%arg0: i32) -> (i32, i32) {
    %c0_i32 = arith.constant 0 : i32
    %c0_i32_0 = arith.constant 0 : i32
    %c0_i32_1 = arith.constant 0 : i32
    return %c0_i32, %c0_i32_0 : i32, i32
  }
  func.func @transform_7(%arg0: i32) -> (i32, i32) {
    %c0_i32 = arith.constant 0 : i32
    %c0_i32_0 = arith.constant 0 : i32
    %c0_i32_1 = arith.constant 0 : i32
    return %c0_i32, %c0_i32_0 : i32, i32
  }
  func.func @transform_8(%arg0: i32) -> (i32, i32) {
    %c0_i32 = arith.constant 0 : i32
    %c0_i32_0 = arith.constant 0 : i32
    %c0_i32_1 = arith.constant 0 : i32
    return %c0_i32, %c0_i32_0 : i32, i32
  }
  func.func @transform_9(%arg0: i32) -> (i32, i32) {
    %c0_i32 = arith.constant 0 : i32
    %c0_i32_0 = arith.constant 0 : i32
    %c0_i32_1 = arith.constant 0 : i32
    return %c0_i32, %c0_i32_0 : i32, i32
  }
  func.func @transform_10(%arg0: i32) -> (i32, i32) {
    %c0_i32 = arith.constant 0 : i32
    %c0_i32_0 = arith.constant 0 : i32
    %c0_i32_1 = arith.constant 0 : i32
    return %c0_i32, %c0_i32_0 : i32, i32
  }
  func.func @transform_11(%arg0: i32) -> (i32, i32) {
    %c0_i32 = arith.constant 0 : i32
    %c0_i32_0 = arith.constant 0 : i32
    return %arg0, %c0_i32 : i32, i32
  }
}

</mosaic_0001>

<bundles_post_ra>
// kernel: tpu_custom_call.1
= control target key start
LH: loop header
LB: loop body
LE: loop exit
PB: predicated region body
PF: predicated region fallthrough
CT: control target
= control target key end

     0   :  { %17 = vsyncpa [#allocation4], 0  ;;  %s808_s0 = inlined_call_operand.hbm [shape: f32[16,16], index: 0, kind: input, shape index: {}]   ;;  %s809_s1 = inlined_call_operand.vmem [shape: f32[16,8], index: 1, kind: input, shape index: {}]   ;;  %s810_s2 = inlined_call_operand.hbm [shape: f32[16,32], index: 2, kind: input, shape index: {}]   ;;  %s811_s3 = inlined_call_operand.vmem [shape: f32[1,32], index: 3, kind: input, shape index: {}]   ;;  %s812_s4 = inlined_call_operand.vmem [shape: f32[32,32], index: 4, kind: input, shape index: {}]   ;;  %s813_s5 = inlined_call_operand.vmem [shape: f32[1,32], index: 5, kind: input, shape index: {}]   ;;  %s814_s6 = inlined_call_operand.vmem [shape: f32[8,32], index: 6, kind: input, shape index: {}]   ;;  %s815_s7 = inlined_call_operand.vmem [shape: f32[1,32], index: 7, kind: input, shape index: {}]   ;;  %s816_s8 = inlined_call_operand.hbm [shape: f32[32,32], index: 8, kind: input, shape index: {}]   ;;  %s817_s9 = inlined_call_operand.vmem [shape: f32[1,32], index: 9, kind: input, shape index: {}]   ;;  %s818_s10 = inlined_call_operand.<no memory space> [shape: f32[1,1], index: 10, kind: input, shape index: {}]   ;;  %s819_s11 = inlined_call_operand.vmem [shape: f32[16,1], index: 11, kind: output, shape index: {}]  }
   0x1   :  { %18 = vsyncpa [#allocation6], 0  ;;  %s643_s17 = smov [#allocation5]   ;;  %s644_s19 = smov [#allocation3]  }
   0x2   :  { %s38_s18 = sshll.u32 %s643_s17, 4  ;;  %s24_s20 = sshll.u32 %s644_s19, 4  ;;  %s39_s18 = int_to_ptr.vmem [resolvable:$true] %s38_s18  ;;  %s708_s20 = int_to_ptr.vmem [resolvable:$true] %s24_s20 }
   0x3   :  { %s573_s23 = scalar_lea.hbm %s810_s2, 256 }
   0x4   :  { %p574_p0 = scmp.ne.s32.totalorder %s810_s2, %s573_s23  ;;  %p577_p1 = scmp.lt.u32.totalorder %s573_s23, %s810_s2 }
   0x6   :  { %p579_p2 = pnand %p577_p1, %p574_p0 }
   0x8   :  { %582 = shalt.err (!%p579_p2)
}
   0x9   :  { %s583_s28 = scalar_lea.vmem %s39_s18, 256  ;;  %p588_p4 = scmp.lt.s32.totalorder %s39_s18, %s39_s18 }
   0xa   :  { %p584_p3 = scmp.ne.s32.totalorder %s39_s18, %s583_s28  ;;  %p589_p5 = scmp.lt.s32.totalorder %s583_s28, %s583_s28 }
   0xc   :  { %p590_p6 = por %p589_p5, %p588_p4 }
   0xe   :  { %p591_p7 = pnand %p590_p6, %p584_p3 }
  0x10   :  { %594 = shalt.err (!%p591_p7)
}
  0x11   :  { %s645_s29 = smov 128   ;;  %s646_s30 = smov 8  }
  0x12   :  { %44 = dma.hbm_to_vmem [thread:$0]  %s810_s2, 256, %s39_s18, [#allocation6], %s645_s29, %s645_s29, %s646_s30  }
  0x13   :  { %s595_s16 = scalar_lea.hbm %s808_s0, 256 }
  0x14   :  { %p596_p8 = scmp.ne.s32.totalorder %s808_s0, %s595_s16  ;;  %p599_p9 = scmp.lt.u32.totalorder %s595_s16, %s808_s0 }
  0x16   :  { %p601_p10 = pnand %p599_p9, %p596_p8 }
  0x18   :  { %604 = shalt.err (!%p601_p10)
}
  0x19   :  { %s605_s23 = scalar_lea.vmem %s708_s20, 256  ;;  %p610_p12 = scmp.lt.s32.totalorder %s708_s20, %s708_s20 }
  0x1a   :  { %p606_p11 = scmp.ne.s32.totalorder %s708_s20, %s605_s23  ;;  %p611_p13 = scmp.lt.s32.totalorder %s605_s23, %s605_s23 }
  0x1c   :  { %p612_p0 = por %p611_p13, %p610_p12 }
  0x1e   :  { %p613_p1 = pnand %p612_p0, %p606_p11 }
  0x20   :  { %616 = shalt.err (!%p613_p1)
}
  0x21   :  { %30 = dma.hbm_to_vmem [thread:$0]  %s808_s0, 256, %s708_s20, [#allocation4], %s645_s29, %s645_s29, %s646_s30  }
  0x22   :  { %s647_s24 = smov [#allocation7]   ;;  %s617_s28 = scalar_lea.hbm %s816_s8, 512 }
  0x23   :  { %s60_s25 = sshll.u32 %s647_s24, 4  ;;  %p618_p2 = scmp.ne.s32.totalorder %s816_s8, %s617_s28  ;;  %s61_s25 = int_to_ptr.vmem [resolvable:$true] %s60_s25 }
  0x24   :  { %p621_p3 = scmp.lt.u32.totalorder %s617_s28, %s816_s8 }
  0x26   :  { %p623_p4 = pnand %p621_p3, %p618_p2 }
  0x28   :  { %626 = shalt.err (!%p623_p4)
}
  0x29   :  { %s627_s16 = scalar_lea.vmem %s61_s25, 512  ;;  %p632_p6 = scmp.lt.s32.totalorder %s61_s25, %s61_s25 }
  0x2a   :  { %p628_p5 = scmp.ne.s32.totalorder %s61_s25, %s627_s16  ;;  %p633_p7 = scmp.lt.s32.totalorder %s627_s16, %s627_s16 }
  0x2c   :  { %p634_p8 = por %p633_p7, %p632_p6 }
  0x2e   :  { %p635_p9 = pnand %p634_p8, %p628_p5 }
  0x30   :  { %638 = shalt.err (!%p635_p9)
}
  0x31   :  { %66 = dma.hbm_to_vmem [thread:$0]  %s816_s8, 512, %s61_s25, [#allocation6], %s645_s29, %s645_s29, %s646_s30  }
  0x32   :  { %639 = dma.done.wait [#allocation4], 256  }
  0x33   :  { %640 = vsyncadd [#allocation4], 4294967040 }
  0x34   :  { %641 = dma.done.wait [#allocation6], 768  }
  0x35   :  { %642 = vsyncadd [#allocation6], 4294966528  ;;  %vm278_vm0 = vcmask 64512   ;;  %v270_v0 = vld [vmem:[%s814_s6] sm:$0xff]  ;;  %v82_v1 = vld [vmem:[#allocation5] sm:$0xff]  ;;  %vm91_vm1 = vcmask 130048   ;;  %v463_v48 = vstv %s818_s10 }
  0x36   :  { %v83_v2 = vld [vmem:[#allocation5 + $0x8] sm:$0xff]  ;;  %524 = vmatprep.subr.mxu0 %v270_v0  ;;  %v268_v4 = vld [vmem:[%s809_s1] sm:$0xff]  ;;  %v269_v5 = vld [vmem:[%s809_s1 + $0x8] sm:$0xff]  ;;  %vm186_vm2 = vcmask 261120   ;;  %vm466_vm3 = vcmask 7168  }
  0x37   :  { %v540_v3 = vpack.c.bf16 %v83_v2, %v82_v1  ;;  %v80_v6 = vld [vmem:[#allocation3] sm:$0xff]  ;;  %525 = vmatpush3.msra.mxu0 %v270_v0  ;;  %526 = vmatprep.mubr.msk.f32.mxu0 %vm278_vm0, %v268_v4  ;;  %v81_v7 = vld [vmem:[#allocation3 + $0x8] sm:$0xff]  ;;  %v364_v13 = vld [vmem:[#allocation7 + $0x10] sm:$0xff] }
  0x38   :  { %527 = vmatmul.mubr.msk.f32.vlgmr.msra.gmra.mrb[0].mxu0 %vm278_vm0, %v269_v5  ;;  %510 = vmatprep.mubr.msk.f32.mxu1 %vm91_vm1, %v80_v6  ;;  %v362_v8 = vld [vmem:[#allocation7] sm:$0xff]  ;;  %v363_v9 = vld [vmem:[#allocation7 + $0x8] sm:$0xff]  ;;  %v365_v15 = vld [vmem:[#allocation7 + $0x18] sm:$0xff] }
  0x39   :  { %541 = vmatprep.subr.bf16.mxu1 %v540_v3  ;;  %v552_v10 = vpack.c.bf16 %v363_v9, %v362_v8  ;;  %v175_v11 = vld [vmem:[%s812_s4] sm:$0xff]  ;;  %v176_v12 = vld [vmem:[%s812_s4 + $0x8] sm:$0xff]  ;;  %v177_v16 = vld [vmem:[%s812_s4 + $0x10] sm:$0xff]  ;;  %v556_v18 = vpack.c.bf16 %v365_v15, %v364_v13 }
  0x3a   :  { %543 = vmatpush3.bf16.msra.mxu1 %v540_v3  ;;  %v544_v14 = vpack.c.bf16 %v176_v12, %v175_v11  ;;  %v178_v17 = vld [vmem:[%s812_s4 + $0x18] sm:$0xff]  ;;  %v481_v20 = vld [vmem:[%s815_s7] ss:$0 sm:$0xff] }
  0x3b   :  { %553 = vmatprep.subr.bf16.mxu0 %v552_v10  ;;  %v548_v19 = vpack.c.bf16 %v178_v17, %v177_v16  ;;  %v475_v25 = vld [vmem:[%s811_s3] ss:$0 sm:$0xff] }
  0x3c   :  { %555 = vmatpush3.bf16.msra.mxu0 %v552_v10  ;;  %545 = vmatprep.subr.bf16.mxu1 %v544_v14  ;;  %v484_v36 = vld [vmem:[%s817_s9] ss:$0 sm:$0xff] }
  0x3d   :  { %511 = vmatmul.mubr.msk.f32.vlgmr.msra.gmra.mrb[0].mxu1 %vm91_vm1, %v81_v7  ;;  %557 = vmatprep.subr.bf16.mxu0 %v556_v18  ;;  %v478_v37 = vld [vmem:[%s813_s5] ss:$0 sm:$0xff] }
  0x3e   :  { %547 = vmatpush3.bf16.msra.mxu1 %v544_v14 }
  0x3f   :  { %549 = vmatprep.subr.bf16.mxu1 %v548_v19 }
  0x40   :  { %559 = vmatpush3.bf16.msra.mxu0 %v556_v18 }
  0x42   :  { %551 = vmatpush3.bf16.msra.mxu1 %v548_v19 }
 0x10b   :  { %v528_v21 = vpop.f32.mrb[0].mxu0 }
 0x10c   :  { %v357_v22 = vadd.f32 %v528_v21, %v481_v20  ;;  %v351_v23 = vpop.f32.mrb[1].mxu0 }
 0x10d   :  { %v352_v24 = vadd.f32 %v481_v20, %v351_v23 }
 0x10e   :  { %565 = vtanh.f32 %v357_v22 }
 0x10f   :  { %567 = vtanh.f32 %v352_v24 }
 0x110   :  { %v512_v26 = vpop.f32.mrb[0].mxu1 }
 0x111   :  { %v170_v27 = vadd.f32 %v512_v26, %v475_v25  ;;  %v164_v28 = vpop.f32.mrb[1].mxu1 }
 0x112   :  { %v165_v29 = vadd.f32 %v475_v25, %v164_v28 }
 0x114   :  { %569 = vtanh.f32 %v165_v29 }
 0x115   :  { %571 = vtanh.f32 %v170_v27 }
 0x118   :  { %v566_v30 = vpop.eup %565 }
 0x119   :  { %v568_v31 = vpop.eup %567 }
 0x11a   :  { %537 = vmatprep.mubr.msk.f32.mxu0 %vm186_vm2, %v568_v31 }
 0x11b   :  { %538 = vmatmul.mubr.msk.f32.vlgmr.msra.gmra.mrb[2].mxu0 %vm186_vm2, %v566_v30 }
 0x11e   :  { %v570_v32 = vpop.eup %569 }
 0x11f   :  { %v572_v33 = vpop.eup %571  ;;  %521 = vmatprep.mubr.msk.f32.mxu1 %vm186_vm2, %v570_v32 }
 0x120   :  { %522 = vmatmul.mubr.msk.f32.vlgmr.msra.gmra.mrb[2].mxu1 %vm186_vm2, %v572_v33 }
 0x1ee   :  { %v539_v34 = vpop.f32.mrb[2].mxu0 }
 0x1ef   :  { %v445_v35 = vpop.f32.mrb[3].mxu0  ;;  %v451_v39 = vadd.f32 %v539_v34, %v484_v36 }
 0x1f0   :  { %v446_v42 = vadd.f32 %v484_v36, %v445_v35 }
 0x1f3   :  { %v523_v38 = vpop.f32.mrb[2].mxu1 }
 0x1f4   :  { %v265_v40 = vadd.f32 %v523_v38, %v478_v37  ;;  %v259_v41 = vpop.f32.mrb[3].mxu1 }
 0x1f5   :  { %v260_v43 = vadd.f32 %v478_v37, %v259_v41 }
 0x1f6   :  { %v455_v44 = vmul.f32 %v451_v39, %v265_v40 }
 0x1f7   :  { %v454_v45 = vmul.f32 %v446_v42, %v260_v43 }
 0x1f8   :  { %v459_v47 = vsel %vm186_vm2, %v455_v44, 0.0 }
 0x1f9   :  { %v456_v46 = vsel %vm186_vm2, %v454_v45, 0.0 }
 0x1fa   :  { %457 = vadd.xlane.f32.xlu0 %v456_v46 }
 0x1fe   :  { %460 = vadd.xlane.f32.xlu0 %v459_v47 }
 0x287   :  { %v458_v49 = vpop.xlane.xlu0 %457 }
 0x288   :  { %v464_v50 = vadd.f32 %v463_v48, %v458_v49 }
 0x28a   :  { %467 = vst.msk [vmem:[%s819_s11] sm:$0xff] %vm466_vm3, %v464_v50 }
 0x28b   :  { %v461_v51 = vpop.xlane.xlu0 %460 }
 0x28c   :  { %v465_v52 = vadd.f32 %v463_v48, %v461_v51 }
 0x28e   :  { %468 = vst.msk [vmem:[%s819_s11 + $0x8] sm:$0xff] %vm466_vm3, %v465_v52 }
 0x28f   :  { %473 = vsyncpa [#allocation4], 1 }
 0x290   :  { %474 = vsyncpa [#allocation6], 1 }

</bundles_post_ra>
